<compile_context>
chip_gen: v5e
topology: v5e:2x2
jax: 0.10.0
libtpu: 0.0.40
codegen_flags: <defaults>
</compile_context>

<pallas_src>
import functools

import jax
import jax.numpy as jnp
from jax.experimental import pallas as pl
from jax.experimental.pallas import tpu as pltpu


def _round_up(x, m):
    return (x + m - 1) // m * m


def _vmem_capacity_bytes():
    try:
        cap = getattr(pltpu.get_tpu_info(), "vmem_capacity_bytes", None)
        if cap:
            return int(cap)
    except Exception:
        pass
    return 64 * 1024 * 1024   # conservative default (v7x per-core VMEM)


def _conv3d_block_kernel(a_ref, w_ref, b_ref, o_ref):
    # a_ref: (tm, Kp)  bf16  -- 27-tap im2col rows
    # w_ref: (Kp, tn)  bf16  -- weight slab for this Cout tile (resident across M tiles)
    # b_ref: (1,  tn)  f32
    # o_ref: (tm, tn)  bf16  -- lane-dense store, written exactly once
    y = jnp.dot(a_ref[...], w_ref[...], preferred_element_type=jnp.float32)
    y = y + b_ref[...]
    o_ref[...] = jnp.where(y > 0, y, 0.1 * y).astype(o_ref.dtype)


@functools.partial(jax.jit, static_argnames=("tm",))
def conv3d_block(x, weight, bias, *, tm=512):
    """Conv3d(k=3, s=1, padding='same') + LeakyReLU(0.1).

    x:      (N, Cin, D, H, W)    float32   (NCDHW, like PyTorch)
    weight: (Cout, Cin, 3, 3, 3) float32   (OIDHW, like PyTorch)
    bias:   (Cout,)              float32
    returns (N, Cout, D, H, W)   float32
    """
    N, Cin, D, H, W = x.shape
    Cout = weight.shape[0]
    M = N * D * H * W
    K27 = 27 * Cin

    # K padding: align to 128 only when cheap (<=32 wasted lanes), else 16.
    k128 = _round_up(K27, 128)
    Kp = k128 if (k128 - K27) <= 32 else _round_up(K27, 16)
    Coutp = _round_up(Cout, 128)          # lane-dense (unmasked) output store

    # ---- tile sizes against a per-chip VMEM budget --------------------------
    cap = _vmem_capacity_bytes()
    budget = min(48 * 1024 * 1024, int(cap * 0.4))

    tn = 128
    for cand in (512, 256):               # keep tn a 128-multiple divisor of Coutp
        if Coutp % cand == 0:
            tn = cand
            break

    tm_ = _round_up(max(64, min(int(tm), _round_up(M, 64))), 16)

    def _step_bytes(t_m, t_n):
        a = t_m * Kp * 2                  # bf16 A tile
        w = Kp * t_n * 2                  # bf16 weight slab
        o = t_m * t_n * 2                 # bf16 out tile
        b = t_n * 4
        return 2 * (a + w + o) + b        # conservatively count all as double-buffered

    while _step_bytes(tm_, tn) > budget and tm_ > 64:
        tm_ = max(64, _round_up(tm_ // 2, 16))
    while _step_bytes(tm_, tn) > budget and tn > 128:
        tn //= 2
    Mp = _round_up(M, tm_)

    # ---- glue: 27-tap im2col (channel-last), K folded over (kd, kh, kw, ci) --
    # TODO(synk): for large Cin, build the taps in-kernel from a halo'd VMEM tile
    # (manual DMA) instead of materialising A27 in HBM.
    xc = jnp.transpose(x, (0, 2, 3, 4, 1))                       # (N, D, H, W, Cin)
    xp = jnp.pad(xc, ((0, 0), (1, 1), (1, 1), (1, 1), (0, 0)))   # (N, D+2, H+2, W+2, Cin)
    taps = [xp[:, kd:kd + D, kh:kh + H, kw:kw + W, :]
            for kd in range(3) for kh in range(3) for kw in range(3)]
    a27 = jnp.concatenate(taps, axis=-1).reshape(M, K27).astype(jnp.bfloat16)
    a27 = jnp.pad(a27, ((0, Mp - M), (0, Kp - K27)))

    # weight (Cout, Cin, kd, kh, kw) -> (kd*kh*kw*Cin, Cout); pad K & Cout.
    w27 = jnp.transpose(weight, (2, 3, 4, 1, 0)).reshape(K27, Cout).astype(jnp.bfloat16)
    w27 = jnp.pad(w27, ((0, Kp - K27), (0, Coutp - Cout)))
    b2 = jnp.pad(bias.reshape(1, Cout), ((0, 0), (0, Coutp - Cout))).astype(jnp.float32)

    grid = (Coutp // tn, Mp // tm_)       # j outer (weights resident across inner i)
    flops = 2 * Mp * Kp * Coutp
    bytes_accessed = (a27.size * 2 * (Coutp // tn) + w27.size * 2
                      + Mp * Coutp * 2 + b2.size * 4)
    vmem_limit = int(min(cap - 2 * 1024 * 1024,
                         max(16 * 1024 * 1024,
                             _step_bytes(tm_, tn) + 4 * 1024 * 1024)))

    out_flat = pl.pallas_call(
        _conv3d_block_kernel,
        out_shape=jax.ShapeDtypeStruct((Mp, Coutp), jnp.bfloat16),
        grid=grid,
        in_specs=[
            pl.BlockSpec((tm_, Kp), lambda j, i: (i, 0)),
            pl.BlockSpec((Kp, tn), lambda j, i: (0, j)),
            pl.BlockSpec((1, tn), lambda j, i: (0, j)),
        ],
        out_specs=pl.BlockSpec((tm_, tn), lambda j, i: (i, j)),
        compiler_params=pltpu.CompilerParams(
            dimension_semantics=("parallel", "parallel"),
            vmem_limit_bytes=vmem_limit),
        cost_estimate=pl.CostEstimate(
            flops=int(flops), transcendentals=0,
            bytes_accessed=int(bytes_accessed)),
    )(a27, w27, b2)

    # Slice away M/Cout padding BEFORE the relayout so the NCDHW transpose never
    # touches padded lanes/rows; cast back to f32 to match the PyTorch contract.
    # TODO(synk): skip the transpose / keep bf16 if the downstream consumer
    # accepts channel-last activations.
    out = out_flat[:M, :Cout].reshape(N, D, H, W, Cout)
    return jnp.transpose(out, (0, 4, 1, 2, 3)).astype(jnp.float32)


def _reference(x, weight, bias):
    y = jax.lax.conv_general_dilated(
        x, weight, window_strides=(1, 1, 1), padding="SAME",
        dimension_numbers=("NCDHW", "OIDHW", "NCDHW"),
        precision=jax.lax.Precision.HIGHEST)
    y = y + bias[None, :, None, None, None]
    return jnp.where(y > 0, y, 0.1 * y)


if __name__ == "__main__":
    key = jax.random.PRNGKey(0)
    kx, kw, kb = jax.random.split(key, 3)

    N, Cin, Cout, D, H, W = 2, 4, 8, 8, 8, 8
    x = jax.random.normal(kx, (N, Cin, D, H, W), dtype=jnp.float32)
    # deterministic synthetic parameters (shapes from nn.Conv3d(Cin, Cout, 3))
    weight = 0.1 * jax.random.normal(kw, (Cout, Cin, 3, 3, 3), dtype=jnp.float32)
    bias = 0.1 * jax.random.normal(kb, (Cout,), dtype=jnp.float32)

    out = conv3d_block(x, weight, bias)
    jax.block_until_ready(out)

    ref = _reference(x, weight, bias)
    assert out.shape == (N, Cout, D, H, W), out.shape
    max_err = float(jnp.max(jnp.abs(out - ref)))
    # bf16 MXU operands + bf16 kernel output => ~1e-2-level deviation expected.
    assert jnp.allclose(out, ref, atol=3e-2, rtol=3e-2), max_err

    print("KERNEL_OK")
</pallas_src>

<mosaic_0001>
module attributes {stable_mosaic.version = 11 : i64} {
  func.func @_conv3d_block_kernel(%arg0: i32, %arg1: i32, %arg2: memref<512x128xbf16, #tpu.memory_space<vmem>>, %arg3: memref<128x128xbf16, #tpu.memory_space<vmem>>, %arg4: memref<1x128xf32, #tpu.memory_space<vmem>>, %arg5: memref<512x128xbf16, #tpu.memory_space<vmem>>) attributes {dimension_semantics = [#tpu.dimension_semantics<parallel>, #tpu.dimension_semantics<parallel>], iteration_bounds = array<i64: 1, 2>, scalar_prefetch = 0 : i64, scratch_operands = 0 : i64, tpu.core_type = #tpu.core_type<tc>, window_params = [{transform_indices = @transform_0, window_bounds = array<i64: 512, 128>}, {transform_indices = @transform_1, window_bounds = array<i64: 128, 128>}, {transform_indices = @transform_2, window_bounds = array<i64: 1, 128>}, {transform_indices = @transform_3, window_bounds = array<i64: 512, 128>}]} {
    %c0 = arith.constant 0 : index
    %c0_0 = arith.constant 0 : index
    %0 = vector.load %arg2[%c0, %c0_0] : memref<512x128xbf16, #tpu.memory_space<vmem>>, vector<512x128xbf16>
    %c0_1 = arith.constant 0 : index
    %c0_2 = arith.constant 0 : index
    %1 = vector.load %arg3[%c0_1, %c0_2] : memref<128x128xbf16, #tpu.memory_space<vmem>>, vector<128x128xbf16>
    %cst = arith.constant dense<0.000000e+00> : vector<512x128xf32>
    %2 = tpu.matmul %0, %1, %cst {dimension_numbers = #tpu.dot_dimension_numbers<[1], [0], [0], [1], [0, 0, 1, 1], [], []>} : vector<512x128xbf16>, vector<128x128xbf16>, vector<512x128xf32> -> vector<512x128xf32>
    %c0_3 = arith.constant 0 : index
    %c0_4 = arith.constant 0 : index
    %3 = vector.load %arg4[%c0_3, %c0_4] : memref<1x128xf32, #tpu.memory_space<vmem>>, vector<1x128xf32>
    %4 = vector.broadcast %3 : vector<1x128xf32> to vector<512x128xf32>
    %5 = arith.addf %2, %4 : vector<512x128xf32>
    %cst_5 = arith.constant 0.000000e+00 : f32
    %6 = vector.broadcast %cst_5 : f32 to vector<512x128xf32>
    %7 = arith.cmpf ogt, %5, %6 : vector<512x128xf32>
    %cst_6 = arith.constant 1.000000e-01 : f32
    %8 = vector.broadcast %cst_6 : f32 to vector<512x128xf32>
    %9 = arith.mulf %8, %5 : vector<512x128xf32>
    %10 = arith.select %7, %5, %9 : vector<512x128xi1>, vector<512x128xf32>
    %11 = arith.truncf %10 : vector<512x128xf32> to vector<512x128xbf16>
    %c0_7 = arith.constant 0 : index
    %c0_8 = arith.constant 0 : index
    %12 = vector.load %arg5[%c0_7, %c0_8] : memref<512x128xbf16, #tpu.memory_space<vmem>>, vector<512x128xbf16>
    tpu.vector_store %arg5[%c0_7, %c0_8], %11 {strides = array<i32>} : memref<512x128xbf16, #tpu.memory_space<vmem>>, vector<512x128xbf16>,
    return
  }
  func.func @transform_0(%arg0: i32, %arg1: i32) -> (i32, i32) {
    %c0_i32 = arith.constant 0 : i32
    %c0_i32_0 = arith.constant 0 : i32
    return %arg1, %c0_i32 : i32, i32
  }
  func.func @transform_1(%arg0: i32, %arg1: i32) -> (i32, i32) {
    %c0_i32 = arith.constant 0 : i32
    %c0_i32_0 = arith.constant 0 : i32
    return %c0_i32, %arg0 : i32, i32
  }
  func.func @transform_2(%arg0: i32, %arg1: i32) -> (i32, i32) {
    %c0_i32 = arith.constant 0 : i32
    %c0_i32_0 = arith.constant 0 : i32
    return %c0_i32, %arg0 : i32, i32
  }
  func.func @transform_3(%arg0: i32, %arg1: i32) -> (i32, i32) {
    %c0_i32 = arith.constant 0 : i32
    return %arg1, %arg0 : i32, i32
  }
}

</mosaic_0001>

<bundles_post_ra>
// kernel: conv3d_block.1
= control target key start
LH: loop header
LB: loop body
LE: loop exit
PB: predicated region body
PF: predicated region fallthrough
CT: control target
= control target key end

     0   :  { %s1637_s12 = smov 0   ;;  %s1639_s13 = smov 0   ;;  %s1841_s0 = inlined_call_operand.vmem [shape: bf16[1024,128], index: 0, kind: input, shape index: {}]   ;;  %s1842_s1 = inlined_call_operand.vmem [shape: bf16[128,128], index: 1, kind: input, shape index: {}]   ;;  %s1843_s2 = inlined_call_operand.vmem [shape: f32[1,128], index: 2, kind: input, shape index: {}]   ;;  %s1844_s3 = inlined_call_operand.vmem [shape: bf16[1024,128], index: 3, kind: output, shape index: {}]  }
   0x1   :  { %s1641_s14 = smov 0  }
   0x2 LB: > { %s22_s15 = sadd.s32 1, %s1611_s13  ;;  %p1146_p0 = scmp.ge.s32.totalorder %s1615_s14, 1  ;;  %s1615_s14 = sphi %s1641_s14, %s13_s14   ;;  %s1611_s13 = sphi %s1639_s13, %s1846_s13   ;;  %s1607_s12 = sphi %s1637_s12, %s1845_s12  }
   0x3   : > { %p23_p1 = scmp.ge.s32.totalorder %s22_s15, 2  ;;  %p169_p2 = scmp.lt.s32.totalorder %s1615_s14, 3 }
   0x5   : > { %s1848_s15 = smov (%p23_p1, %s22_s15), 0  ;;  %p170_p3 = pnand %p1146_p0, %p169_p2 }
   0x6   : > { %s1147_s24 = sshll.u32 (!%p170_p3), %s1607_s12, 6 }
   0x7   : > { %173 = sbr.rel (%p170_p3) target bundleno = 306 (0x132), region = 32  ;;  %p204_p4 = scmp.lt.s32.totalorder (!%p170_p3), %s1147_s24, 127 }
   0xc   : > { %v1352_v0 = vld [vmem:[%s1842_s1 + $0x38] sm:$0xff]  ;;  %v1351_v1 = vld [vmem:[%s1842_s1 + $0x30] sm:$0xff]  ;;  %v1350_v2 = vld [vmem:[%s1842_s1 + $0x28] sm:$0xff]  ;;  %s1850_s24 = smov (!%p204_p4, %s1147_s24), 127 }
   0xd   : > { %549 = vmatpush.bf16.msra.mxu0 %v1352_v0  ;;  %1544 = vmatpush.bf16.msra.mxu1 %v1352_v0  ;;  %v1349_v3 = vld [vmem:[%s1842_s1 + $0x20] sm:$0xff]  ;;  %v1348_v4 = vld [vmem:[%s1842_s1 + $0x18] sm:$0xff]  ;;  %v1347_v5 = vld [vmem:[%s1842_s1 + $0x10] sm:$0xff]  ;;  %s1148_s4 = sshll.u32 %s1850_s24, 2 }
   0xe   : > { %1545 = vmatpush.bf16.msra.mxu2 %v1352_v0  ;;  %1546 = vmatpush.bf16.msra.mxu3 %v1352_v0  ;;  %v1346_v6 = vld [vmem:[%s1842_s1 + $0x8] sm:$0xff]  ;;  %v1345_v7 = vld [vmem:[%s1842_s1] sm:$0xff]  ;;  %s1690_s9 = scalar_lea.vmem %s1841_s0, %s1148_s4  ;;  %s1740_s17 = scalar_lea.vmem %s1844_s3, %s1148_s4 }
   0xf   : > { %v1313_v8 = vld [vmem:[%s1690_s9] sm:$0xff]  ;;  %v1314_v12 = vld [vmem:[%s1690_s9 + $0x8] sm:$0xff]  ;;  %v1315_v16 = vld [vmem:[%s1690_s9 + $0x10] sm:$0xff] }
  0x10   : > { %v1321_v9 = vld [vmem:[%s1690_s9 + $0x40] sm:$0xff]  ;;  %v1322_v13 = vld [vmem:[%s1690_s9 + $0x48] sm:$0xff]  ;;  %v1323_v17 = vld [vmem:[%s1690_s9 + $0x50] sm:$0xff] }
  0x11   : > { %550 = vmatpush.bf16.msra.mxu0 %v1351_v1  ;;  %1547 = vmatpush.bf16.msra.mxu1 %v1351_v1  ;;  %v1329_v10 = vld [vmem:[%s1690_s9 + $0x80] sm:$0xff]  ;;  %v1330_v14 = vld [vmem:[%s1690_s9 + $0x88] sm:$0xff]  ;;  %v1331_v18 = vld [vmem:[%s1690_s9 + $0x90] sm:$0xff] }
  0x12   : > { %1548 = vmatpush.bf16.msra.mxu2 %v1351_v1  ;;  %1549 = vmatpush.bf16.msra.mxu3 %v1351_v1  ;;  %v1337_v11 = vld [vmem:[%s1690_s9 + $0xc0] sm:$0xff]  ;;  %v1338_v15 = vld [vmem:[%s1690_s9 + $0xc8] sm:$0xff]  ;;  %v1339_v19 = vld [vmem:[%s1690_s9 + $0xd0] sm:$0xff] }
  0x13   : > { %v1316_v20 = vld [vmem:[%s1690_s9 + $0x18] sm:$0xff]  ;;  %v1317_v24 = vld [vmem:[%s1690_s9 + $0x20] sm:$0xff]  ;;  %v1318_v28 = vld [vmem:[%s1690_s9 + $0x28] sm:$0xff] }
  0x14   : > { %v1324_v21 = vld [vmem:[%s1690_s9 + $0x58] sm:$0xff]  ;;  %v1325_v25 = vld [vmem:[%s1690_s9 + $0x60] sm:$0xff]  ;;  %v1326_v29 = vld [vmem:[%s1690_s9 + $0x68] sm:$0xff] }
  0x15   : > { %551 = vmatpush.bf16.msra.mxu0 %v1350_v2  ;;  %1550 = vmatpush.bf16.msra.mxu1 %v1350_v2  ;;  %v1332_v22 = vld [vmem:[%s1690_s9 + $0x98] sm:$0xff]  ;;  %v1333_v26 = vld [vmem:[%s1690_s9 + $0xa0] sm:$0xff]  ;;  %v1334_v30 = vld [vmem:[%s1690_s9 + $0xa8] sm:$0xff] }
  0x16   : > { %1551 = vmatpush.bf16.msra.mxu2 %v1350_v2  ;;  %1552 = vmatpush.bf16.msra.mxu3 %v1350_v2  ;;  %v1340_v23 = vld [vmem:[%s1690_s9 + $0xd8] sm:$0xff]  ;;  %v1341_v27 = vld [vmem:[%s1690_s9 + $0xe0] sm:$0xff]  ;;  %v1342_v31 = vld [vmem:[%s1690_s9 + $0xe8] sm:$0xff] }
  0x17   : > { %v1319_v32 = vld [vmem:[%s1690_s9 + $0x30] sm:$0xff]  ;;  %v1320_v36 = vld [vmem:[%s1690_s9 + $0x38] sm:$0xff]  ;;  %v1727_v42 = vld [vmem:[%s1843_s2] ss:$0 sm:$0xff] }
  0x18   : > { %v1327_v33 = vld [vmem:[%s1690_s9 + $0x70] sm:$0xff]  ;;  %v1328_v37 = vld [vmem:[%s1690_s9 + $0x78] sm:$0xff] }
  0x19   : > { %552 = vmatpush.bf16.msra.mxu0 %v1349_v3  ;;  %1553 = vmatpush.bf16.msra.mxu1 %v1349_v3  ;;  %v1335_v34 = vld [vmem:[%s1690_s9 + $0xb0] sm:$0xff]  ;;  %v1336_v38 = vld [vmem:[%s1690_s9 + $0xb8] sm:$0xff] }
  0x1a   : > { %1554 = vmatpush.bf16.msra.mxu2 %v1349_v3  ;;  %1555 = vmatpush.bf16.msra.mxu3 %v1349_v3  ;;  %v1343_v35 = vld [vmem:[%s1690_s9 + $0xf0] sm:$0xff]  ;;  %v1344_v39 = vld [vmem:[%s1690_s9 + $0xf8] sm:$0xff] }
  0x1d   : > { %553 = vmatpush.bf16.msra.mxu0 %v1348_v4  ;;  %1556 = vmatpush.bf16.msra.mxu1 %v1348_v4 }
  0x1e   : > { %1557 = vmatpush.bf16.msra.mxu2 %v1348_v4  ;;  %1558 = vmatpush.bf16.msra.mxu3 %v1348_v4 }
  0x21   : > { %554 = vmatpush.bf16.msra.mxu0 %v1347_v5  ;;  %1559 = vmatpush.bf16.msra.mxu1 %v1347_v5 }
  0x22   : > { %1560 = vmatpush.bf16.msra.mxu2 %v1347_v5  ;;  %1561 = vmatpush.bf16.msra.mxu3 %v1347_v5 }
  0x25   : > { %555 = vmatpush.bf16.msra.mxu0 %v1346_v6  ;;  %1562 = vmatpush.bf16.msra.mxu1 %v1346_v6 }
  0x26   : > { %1563 = vmatpush.bf16.msra.mxu2 %v1346_v6  ;;  %1564 = vmatpush.bf16.msra.mxu3 %v1346_v6 }
  0x29   : > { %556 = vmatpush.bf16.msra.mxu0 %v1345_v7  ;;  %1565 = vmatpush.bf16.msra.mxu1 %v1345_v7 }
  0x2a   : > { %1566 = vmatpush.bf16.msra.mxu2 %v1345_v7  ;;  %1567 = vmatpush.bf16.msra.mxu3 %v1345_v7 }
  0x2c   : > { %557 = vmatmul.bf16.vlgmr.msra.gmra.mxu0 %v1313_v8  ;;  %597 = vmatmul.bf16.vlgmr.msra.gmra.mxu1 %v1321_v9 }
  0x2d   : > { %637 = vmatmul.bf16.vlgmr.msra.gmra.mxu2 %v1329_v10  ;;  %677 = vmatmul.bf16.vlgmr.msra.gmra.mxu3 %v1337_v11 }
  0x3c   : > { %562 = vmatmul.bf16.gmra.mxu0 %v1314_v12  ;;  %602 = vmatmul.bf16.gmra.mxu1 %v1322_v13 }
  0x3d   : > { %642 = vmatmul.bf16.gmra.mxu2 %v1330_v14  ;;  %682 = vmatmul.bf16.gmra.mxu3 %v1338_v15 }
  0x4c   : > { %567 = vmatmul.bf16.gmra.mxu0 %v1315_v16  ;;  %607 = vmatmul.bf16.gmra.mxu1 %v1323_v17 }
  0x4d   : > { %647 = vmatmul.bf16.gmra.mxu2 %v1331_v18  ;;  %687 = vmatmul.bf16.gmra.mxu3 %v1339_v19 }
  0x5c   : > { %572 = vmatmul.bf16.gmra.mxu0 %v1316_v20  ;;  %612 = vmatmul.bf16.gmra.mxu1 %v1324_v21 }
  0x5d   : > { %652 = vmatmul.bf16.gmra.mxu2 %v1332_v22  ;;  %692 = vmatmul.bf16.gmra.mxu3 %v1340_v23 }
  0x6c   : > { %577 = vmatmul.bf16.gmra.mxu0 %v1317_v24  ;;  %617 = vmatmul.bf16.gmra.mxu1 %v1325_v25 }
  0x6d   : > { %657 = vmatmul.bf16.gmra.mxu2 %v1333_v26  ;;  %697 = vmatmul.bf16.gmra.mxu3 %v1341_v27 }
  0x7c   : > { %582 = vmatmul.bf16.gmra.mxu0 %v1318_v28  ;;  %622 = vmatmul.bf16.gmra.mxu1 %v1326_v29 }
  0x7d   : > { %662 = vmatmul.bf16.gmra.mxu2 %v1334_v30  ;;  %702 = vmatmul.bf16.gmra.mxu3 %v1342_v31 }
  0x8c   : > { %587 = vmatmul.bf16.gmra.mxu0 %v1319_v32  ;;  %627 = vmatmul.bf16.gmra.mxu1 %v1327_v33 }
  0x8d   : > { %667 = vmatmul.bf16.gmra.mxu2 %v1335_v34  ;;  %707 = vmatmul.bf16.gmra.mxu3 %v1343_v35 }
  0x9c   : > { %592 = vmatmul.bf16.gmra.mxu0 %v1320_v36  ;;  %632 = vmatmul.bf16.gmra.mxu1 %v1328_v37 }
  0x9d   : > { %672 = vmatmul.bf16.gmra.mxu2 %v1336_v38  ;;  %712 = vmatmul.bf16.gmra.mxu3 %v1344_v39 }
  0xa9   : > { %v558_v40 = vpop.f32.mrf.mxu0  ;;  %v598_v41 = vpop.f32.mrf.mxu1 }
  0xaa   : > { %v559_v43 = vadd.f32 %v1727_v42, %v558_v40  ;;  %v599_v44 = vadd.f32 %v1727_v42, %v598_v41 }
  0xac   : > { %v782_v49 = vmul.f32 0.1, %v559_v43  ;;  %v798_v50 = vmul.f32 0.1, %v599_v44  ;;  %vm718_vm0 = vcmp.gt.f32.partialorder %v559_v43, 0.0  ;;  %vm734_vm1 = vcmp.gt.f32.partialorder %v599_v44, 0.0 }
  0xae   : > { %v846_v57 = vsel %vm718_vm0, %v559_v43, %v782_v49  ;;  %v862_v58 = vsel %vm734_vm1, %v599_v44, %v798_v50 }
  0xb0   : > { %v638_v45 = vpop.f32.mrf.mxu2  ;;  %v678_v46 = vpop.f32.mrf.mxu3 }
  0xb1   : > { %v560_v47 = vpop.f32.mrf.mxu0  ;;  %v600_v48 = vpop.f32.mrf.mxu1  ;;  %v639_v55 = vadd.f32 %v1727_v42, %v638_v45  ;;  %v679_v56 = vadd.f32 %v1727_v42, %v678_v46 }
  0xb2   : > { %v561_v51 = vadd.f32 %v1727_v42, %v560_v47  ;;  %v601_v52 = vadd.f32 %v1727_v42, %v600_v48 }
  0xb3   : > { %v814_v1 = vmul.f32 0.1, %v639_v55  ;;  %v830_v2 = vmul.f32 0.1, %v679_v56  ;;  %vm750_vm4 = vcmp.gt.f32.partialorder %v639_v55, 0.0  ;;  %vm766_vm5 = vcmp.gt.f32.partialorder %v679_v56, 0.0 }
  0xb4   : > { %vm719_vm2 = vcmp.gt.f32.partialorder %v561_v51, 0.0  ;;  %v783_v53 = vmul.f32 0.1, %v561_v51  ;;  %vm735_vm3 = vcmp.gt.f32.partialorder %v601_v52, 0.0  ;;  %v799_v54 = vmul.f32 0.1, %v601_v52 }
  0xb5   : > { %v878_v9 = vsel %vm750_vm4, %v639_v55, %v814_v1  ;;  %v894_v10 = vsel %vm766_vm5, %v679_v56, %v830_v2 }
  0xb6   : > { %v847_v59 = vsel %vm719_vm2, %v561_v51, %v783_v53  ;;  %v863_v60 = vsel %vm735_vm3, %v601_v52, %v799_v54 }
  0xb7   : > { %v1356_v61 = vpack.c.bf16 %v847_v59, %v846_v57  ;;  %v1396_v62 = vpack.c.bf16 %v863_v60, %v862_v58 }
  0xb8   : > { %v640_v63 = vpop.f32.mrf.mxu2  ;;  %v680_v0 = vpop.f32.mrf.mxu3 }
  0xb9   : > { %1357 = vst [vmem:[%s1740_s17] sm:$0xff] %v1356_v61   ;;  %v641_v3 = vadd.f32 %v1727_v42, %v640_v63  ;;  %v681_v4 = vadd.f32 %v1727_v42, %v680_v0  ;;  %v563_v5 = vpop.f32.mrf.mxu0  ;;  %v603_v6 = vpop.f32.mrf.mxu1 }
  0xba   : > { %1520 = vst [vmem:[%s1740_s17 + $0x40] sm:$0xff] %v1396_v62   ;;  %v564_v15 = vadd.f32 %v1727_v42, %v563_v5  ;;  %v604_v16 = vadd.f32 %v1727_v42, %v603_v6 }
  0xbb   : > { %vm751_vm6 = vcmp.gt.f32.partialorder %v641_v3, 0.0  ;;  %v815_v7 = vmul.f32 0.1, %v641_v3  ;;  %vm767_vm7 = vcmp.gt.f32.partialorder %v681_v4, 0.0  ;;  %v831_v8 = vmul.f32 0.1, %v681_v4 }
  0xbc   : > { %v784_v21 = vmul.f32 0.1, %v564_v15  ;;  %v800_v22 = vmul.f32 0.1, %v604_v16  ;;  %vm720_vm8 = vcmp.gt.f32.partialorder %v564_v15, 0.0  ;;  %vm736_vm9 = vcmp.gt.f32.partialorder %v604_v16, 0.0 }
  0xbd   : > { %v879_v11 = vsel %vm751_vm6, %v641_v3, %v815_v7  ;;  %v895_v12 = vsel %vm767_vm7, %v681_v4, %v831_v8 }
  0xbe   : > { %v1436_v13 = vpack.c.bf16 %v879_v11, %v878_v9  ;;  %v1476_v14 = vpack.c.bf16 %v895_v12, %v894_v10  ;;  %v848_v29 = vsel %vm720_vm8, %v564_v15, %v784_v21  ;;  %v864_v30 = vsel %vm736_vm9, %v604_v16, %v800_v22 }
  0xc0   : > { %1528 = vst [vmem:[%s1740_s17 + $0x80] sm:$0xff] %v1436_v13   ;;  %v643_v17 = vpop.f32.mrf.mxu2  ;;  %v683_v18 = vpop.f32.mrf.mxu3 }
  0xc1   : > { %1536 = vst [vmem:[%s1740_s17 + $0xc0] sm:$0xff] %v1476_v14   ;;  %v565_v19 = vpop.f32.mrf.mxu0  ;;  %v605_v20 = vpop.f32.mrf.mxu1  ;;  %v644_v27 = vadd.f32 %v1727_v42, %v643_v17  ;;  %v684_v28 = vadd.f32 %v1727_v42, %v683_v18 }
  0xc2   : > { %v566_v23 = vadd.f32 %v1727_v42, %v565_v19  ;;  %v606_v24 = vadd.f32 %v1727_v42, %v605_v20 }
  0xc3   : > { %v816_v37 = vmul.f32 0.1, %v644_v27  ;;  %v832_v38 = vmul.f32 0.1, %v684_v28  ;;  %vm752_vm12 = vcmp.gt.f32.partialorder %v644_v27, 0.0  ;;  %vm768_vm13 = vcmp.gt.f32.partialorder %v684_v28, 0.0 }
  0xc4   : > { %vm721_vm10 = vcmp.gt.f32.partialorder %v566_v23, 0.0  ;;  %v785_v25 = vmul.f32 0.1, %v566_v23  ;;  %vm737_vm11 = vcmp.gt.f32.partialorder %v606_v24, 0.0  ;;  %v801_v26 = vmul.f32 0.1, %v606_v24 }
  0xc5   : > { %v880_v46 = vsel %vm752_vm12, %v644_v27, %v816_v37  ;;  %v896_v47 = vsel %vm768_vm13, %v684_v28, %v832_v38 }
  0xc6   : > { %v849_v31 = vsel %vm721_vm10, %v566_v23, %v785_v25  ;;  %v865_v32 = vsel %vm737_vm11, %v606_v24, %v801_v26 }
  0xc7   : > { %v1361_v33 = vpack.c.bf16 %v849_v31, %v848_v29  ;;  %v1401_v34 = vpack.c.bf16 %v865_v32, %v864_v30 }
  0xc8   : > { %v645_v35 = vpop.f32.mrf.mxu2  ;;  %v685_v36 = vpop.f32.mrf.mxu3 }
  0xc9   : > { %1513 = vst [vmem:[%s1740_s17 + $0x8] sm:$0xff] %v1361_v33   ;;  %v646_v39 = vadd.f32 %v1727_v42, %v645_v35  ;;  %v686_v40 = vadd.f32 %v1727_v42, %v685_v36  ;;  %v568_v41 = vpop.f32.mrf.mxu0  ;;  %v608_v43 = vpop.f32.mrf.mxu1 }
  0xca   : > { %1521 = vst [vmem:[%s1740_s17 + $0x48] sm:$0xff] %v1401_v34   ;;  %v569_v52 = vadd.f32 %v1727_v42, %v568_v41  ;;  %v609_v53 = vadd.f32 %v1727_v42, %v608_v43 }
  0xcb   : > { %vm753_vm14 = vcmp.gt.f32.partialorder %v646_v39, 0.0  ;;  %v817_v44 = vmul.f32 0.1, %v646_v39  ;;  %vm769_vm15 = vcmp.gt.f32.partialorder %v686_v40, 0.0  ;;  %v833_v45 = vmul.f32 0.1, %v686_v40 }
  0xcc   : > { %v786_v58 = vmul.f32 0.1, %v569_v52  ;;  %v802_v59 = vmul.f32 0.1, %v609_v53  ;;  %vm722_vm0 = vcmp.gt.f32.partialorder %v569_v52, 0.0  ;;  %vm738_vm1 = vcmp.gt.f32.partialorder %v609_v53, 0.0 }
  0xcd   : > { %v881_v48 = vsel %vm753_vm14, %v646_v39, %v817_v44  ;;  %v897_v49 = vsel %vm769_vm15, %v686_v40, %v833_v45 }
  0xce   : > { %v1441_v50 = vpack.c.bf16 %v881_v48, %v880_v46  ;;  %v1481_v51 = vpack.c.bf16 %v897_v49, %v896_v47  ;;  %v850_v2 = vsel %vm722_vm0, %v569_v52, %v786_v58  ;;  %v866_v3 = vsel %vm738_vm1, %v609_v53, %v802_v59 }
  0xd0   : > { %1529 = vst [vmem:[%s1740_s17 + $0x88] sm:$0xff] %v1441_v50   ;;  %v648_v54 = vpop.f32.mrf.mxu2  ;;  %v688_v55 = vpop.f32.mrf.mxu3 }
  0xd1   : > { %1537 = vst [vmem:[%s1740_s17 + $0xc8] sm:$0xff] %v1481_v51   ;;  %v570_v56 = vpop.f32.mrf.mxu0  ;;  %v610_v57 = vpop.f32.mrf.mxu1  ;;  %v649_v0 = vadd.f32 %v1727_v42, %v648_v54  ;;  %v689_v1 = vadd.f32 %v1727_v42, %v688_v55 }
  0xd2   : > { %v571_v60 = vadd.f32 %v1727_v42, %v570_v56  ;;  %v611_v61 = vadd.f32 %v1727_v42, %v610_v57 }
  0xd3   : > { %v818_v10 = vmul.f32 0.1, %v649_v0  ;;  %v834_v11 = vmul.f32 0.1, %v689_v1  ;;  %vm754_vm4 = vcmp.gt.f32.partialorder %v649_v0, 0.0  ;;  %vm770_vm5 = vcmp.gt.f32.partialorder %v689_v1, 0.0 }
  0xd4   : > { %vm723_vm2 = vcmp.gt.f32.partialorder %v571_v60, 0.0  ;;  %v787_v62 = vmul.f32 0.1, %v571_v60  ;;  %vm739_vm3 = vcmp.gt.f32.partialorder %v611_v61, 0.0  ;;  %v803_v63 = vmul.f32 0.1, %v611_v61 }
  0xd5   : > { %v882_v18 = vsel %vm754_vm4, %v649_v0, %v818_v10  ;;  %v898_v19 = vsel %vm770_vm5, %v689_v1, %v834_v11 }
  0xd6   : > { %v851_v4 = vsel %vm723_vm2, %v571_v60, %v787_v62  ;;  %v867_v5 = vsel %vm739_vm3, %v611_v61, %v803_v63 }
  0xd7   : > { %v1366_v6 = vpack.c.bf16 %v851_v4, %v850_v2  ;;  %v1406_v7 = vpack.c.bf16 %v867_v5, %v866_v3 }
  0xd8   : > { %v650_v8 = vpop.f32.mrf.mxu2  ;;  %v690_v9 = vpop.f32.mrf.mxu3 }
  0xd9   : > { %1514 = vst [vmem:[%s1740_s17 + $0x10] sm:$0xff] %v1366_v6   ;;  %v651_v12 = vadd.f32 %v1727_v42, %v650_v8  ;;  %v691_v13 = vadd.f32 %v1727_v42, %v690_v9  ;;  %v573_v14 = vpop.f32.mrf.mxu0  ;;  %v613_v15 = vpop.f32.mrf.mxu1 }
  0xda   : > { %1522 = vst [vmem:[%s1740_s17 + $0x50] sm:$0xff] %v1406_v7   ;;  %v574_v24 = vadd.f32 %v1727_v42, %v573_v14  ;;  %v614_v25 = vadd.f32 %v1727_v42, %v613_v15 }
  0xdb   : > { %vm755_vm6 = vcmp.gt.f32.partialorder %v651_v12, 0.0  ;;  %v819_v16 = vmul.f32 0.1, %v651_v12  ;;  %vm771_vm7 = vcmp.gt.f32.partialorder %v691_v13, 0.0  ;;  %v835_v17 = vmul.f32 0.1, %v691_v13 }
  0xdc   : > { %v788_v30 = vmul.f32 0.1, %v574_v24  ;;  %v804_v31 = vmul.f32 0.1, %v614_v25  ;;  %vm724_vm8 = vcmp.gt.f32.partialorder %v574_v24, 0.0  ;;  %vm740_vm9 = vcmp.gt.f32.partialorder %v614_v25, 0.0 }
  0xdd   : > { %v883_v20 = vsel %vm755_vm6, %v651_v12, %v819_v16  ;;  %v899_v21 = vsel %vm771_vm7, %v691_v13, %v835_v17 }
  0xde   : > { %v1446_v22 = vpack.c.bf16 %v883_v20, %v882_v18  ;;  %v1486_v23 = vpack.c.bf16 %v899_v21, %v898_v19  ;;  %v852_v38 = vsel %vm724_vm8, %v574_v24, %v788_v30  ;;  %v868_v39 = vsel %vm740_vm9, %v614_v25, %v804_v31 }
  0xe0   : > { %1530 = vst [vmem:[%s1740_s17 + $0x90] sm:$0xff] %v1446_v22   ;;  %v653_v26 = vpop.f32.mrf.mxu2  ;;  %v693_v27 = vpop.f32.mrf.mxu3 }
  0xe1   : > { %1538 = vst [vmem:[%s1740_s17 + $0xd0] sm:$0xff] %v1486_v23   ;;  %v575_v28 = vpop.f32.mrf.mxu0  ;;  %v615_v29 = vpop.f32.mrf.mxu1  ;;  %v654_v36 = vadd.f32 %v1727_v42, %v653_v26  ;;  %v694_v37 = vadd.f32 %v1727_v42, %v693_v27 }
  0xe2   : > { %v576_v32 = vadd.f32 %v1727_v42, %v575_v28  ;;  %v616_v33 = vadd.f32 %v1727_v42, %v615_v29 }
  0xe3   : > { %v820_v47 = vmul.f32 0.1, %v654_v36  ;;  %v836_v48 = vmul.f32 0.1, %v694_v37  ;;  %vm756_vm12 = vcmp.gt.f32.partialorder %v654_v36, 0.0  ;;  %vm772_vm13 = vcmp.gt.f32.partialorder %v694_v37, 0.0 }
  0xe4   : > { %vm725_vm10 = vcmp.gt.f32.partialorder %v576_v32, 0.0  ;;  %v789_v34 = vmul.f32 0.1, %v576_v32  ;;  %vm741_vm11 = vcmp.gt.f32.partialorder %v616_v33, 0.0  ;;  %v805_v35 = vmul.f32 0.1, %v616_v33 }
  0xe5   : > { %v884_v55 = vsel %vm756_vm12, %v654_v36, %v820_v47  ;;  %v900_v56 = vsel %vm772_vm13, %v694_v37, %v836_v48 }
  0xe6   : > { %v853_v40 = vsel %vm725_vm10, %v576_v32, %v789_v34  ;;  %v869_v41 = vsel %vm741_vm11, %v616_v33, %v805_v35 }
  0xe7   : > { %v1371_v43 = vpack.c.bf16 %v853_v40, %v852_v38  ;;  %v1411_v44 = vpack.c.bf16 %v869_v41, %v868_v39 }
  0xe8   : > { %v655_v45 = vpop.f32.mrf.mxu2  ;;  %v695_v46 = vpop.f32.mrf.mxu3 }
  0xe9   : > { %1515 = vst [vmem:[%s1740_s17 + $0x18] sm:$0xff] %v1371_v43   ;;  %v656_v49 = vadd.f32 %v1727_v42, %v655_v45  ;;  %v696_v50 = vadd.f32 %v1727_v42, %v695_v46  ;;  %v578_v51 = vpop.f32.mrf.mxu0  ;;  %v618_v52 = vpop.f32.mrf.mxu1 }
  0xea   : > { %1523 = vst [vmem:[%s1740_s17 + $0x58] sm:$0xff] %v1411_v44   ;;  %v579_v61 = vadd.f32 %v1727_v42, %v578_v51  ;;  %v619_v62 = vadd.f32 %v1727_v42, %v618_v52 }
  0xeb   : > { %vm757_vm14 = vcmp.gt.f32.partialorder %v656_v49, 0.0  ;;  %v821_v53 = vmul.f32 0.1, %v656_v49  ;;  %vm773_vm15 = vcmp.gt.f32.partialorder %v696_v50, 0.0  ;;  %v837_v54 = vmul.f32 0.1, %v696_v50 }
  0xec   : > { %v790_v3 = vmul.f32 0.1, %v579_v61  ;;  %v806_v4 = vmul.f32 0.1, %v619_v62  ;;  %vm726_vm0 = vcmp.gt.f32.partialorder %v579_v61, 0.0  ;;  %vm742_vm1 = vcmp.gt.f32.partialorder %v619_v62, 0.0 }
  0xed   : > { %v885_v57 = vsel %vm757_vm14, %v656_v49, %v821_v53  ;;  %v901_v58 = vsel %vm773_vm15, %v696_v50, %v837_v54 }
  0xee   : > { %v1451_v59 = vpack.c.bf16 %v885_v57, %v884_v55  ;;  %v1491_v60 = vpack.c.bf16 %v901_v58, %v900_v56  ;;  %v854_v11 = vsel %vm726_vm0, %v579_v61, %v790_v3  ;;  %v870_v12 = vsel %vm742_vm1, %v619_v62, %v806_v4 }
  0xf0   : > { %1531 = vst [vmem:[%s1740_s17 + $0x98] sm:$0xff] %v1451_v59   ;;  %v658_v63 = vpop.f32.mrf.mxu2  ;;  %v698_v0 = vpop.f32.mrf.mxu3 }
  0xf1   : > { %1539 = vst [vmem:[%s1740_s17 + $0xd8] sm:$0xff] %v1491_v60   ;;  %v580_v1 = vpop.f32.mrf.mxu0  ;;  %v620_v2 = vpop.f32.mrf.mxu1  ;;  %v659_v9 = vadd.f32 %v1727_v42, %v658_v63  ;;  %v699_v10 = vadd.f32 %v1727_v42, %v698_v0 }
  0xf2   : > { %v581_v5 = vadd.f32 %v1727_v42, %v580_v1  ;;  %v621_v6 = vadd.f32 %v1727_v42, %v620_v2 }
  0xf3   : > { %v822_v19 = vmul.f32 0.1, %v659_v9  ;;  %v838_v20 = vmul.f32 0.1, %v699_v10  ;;  %vm758_vm4 = vcmp.gt.f32.partialorder %v659_v9, 0.0  ;;  %vm774_vm5 = vcmp.gt.f32.partialorder %v699_v10, 0.0 }
  0xf4   : > { %vm727_vm2 = vcmp.gt.f32.partialorder %v581_v5, 0.0  ;;  %v791_v7 = vmul.f32 0.1, %v581_v5  ;;  %vm743_vm3 = vcmp.gt.f32.partialorder %v621_v6, 0.0  ;;  %v807_v8 = vmul.f32 0.1, %v621_v6 }
  0xf5   : > { %v886_v27 = vsel %vm758_vm4, %v659_v9, %v822_v19  ;;  %v902_v28 = vsel %vm774_vm5, %v699_v10, %v838_v20 }
  0xf6   : > { %v855_v13 = vsel %vm727_vm2, %v581_v5, %v791_v7  ;;  %v871_v14 = vsel %vm743_vm3, %v621_v6, %v807_v8 }
  0xf7   : > { %v1376_v15 = vpack.c.bf16 %v855_v13, %v854_v11  ;;  %v1416_v16 = vpack.c.bf16 %v871_v14, %v870_v12 }
  0xf8   : > { %v660_v17 = vpop.f32.mrf.mxu2  ;;  %v700_v18 = vpop.f32.mrf.mxu3 }
  0xf9   : > { %1516 = vst [vmem:[%s1740_s17 + $0x20] sm:$0xff] %v1376_v15   ;;  %v661_v21 = vadd.f32 %v1727_v42, %v660_v17  ;;  %v701_v22 = vadd.f32 %v1727_v42, %v700_v18  ;;  %v583_v23 = vpop.f32.mrf.mxu0  ;;  %v623_v24 = vpop.f32.mrf.mxu1 }
  0xfa   : > { %1524 = vst [vmem:[%s1740_s17 + $0x60] sm:$0xff] %v1416_v16   ;;  %v584_v33 = vadd.f32 %v1727_v42, %v583_v23  ;;  %v624_v34 = vadd.f32 %v1727_v42, %v623_v24 }
  0xfb   : > { %vm759_vm6 = vcmp.gt.f32.partialorder %v661_v21, 0.0  ;;  %v823_v25 = vmul.f32 0.1, %v661_v21  ;;  %vm775_vm7 = vcmp.gt.f32.partialorder %v701_v22, 0.0  ;;  %v839_v26 = vmul.f32 0.1, %v701_v22 }
  0xfc   : > { %v792_v39 = vmul.f32 0.1, %v584_v33  ;;  %v808_v40 = vmul.f32 0.1, %v624_v34  ;;  %vm728_vm8 = vcmp.gt.f32.partialorder %v584_v33, 0.0  ;;  %vm744_vm9 = vcmp.gt.f32.partialorder %v624_v34, 0.0 }
  0xfd   : > { %v887_v29 = vsel %vm759_vm6, %v661_v21, %v823_v25  ;;  %v903_v30 = vsel %vm775_vm7, %v701_v22, %v839_v26 }
  0xfe   : > { %v1456_v31 = vpack.c.bf16 %v887_v29, %v886_v27  ;;  %v1496_v32 = vpack.c.bf16 %v903_v30, %v902_v28  ;;  %v856_v48 = vsel %vm728_vm8, %v584_v33, %v792_v39  ;;  %v872_v49 = vsel %vm744_vm9, %v624_v34, %v808_v40 }
 0x100   : > { %1532 = vst [vmem:[%s1740_s17 + $0xa0] sm:$0xff] %v1456_v31   ;;  %v663_v35 = vpop.f32.mrf.mxu2  ;;  %v703_v36 = vpop.f32.mrf.mxu3 }
 0x101   : > { %1540 = vst [vmem:[%s1740_s17 + $0xe0] sm:$0xff] %v1496_v32   ;;  %v585_v37 = vpop.f32.mrf.mxu0  ;;  %v625_v38 = vpop.f32.mrf.mxu1  ;;  %v664_v46 = vadd.f32 %v1727_v42, %v663_v35  ;;  %v704_v47 = vadd.f32 %v1727_v42, %v703_v36 }
 0x102   : > { %v586_v41 = vadd.f32 %v1727_v42, %v585_v37  ;;  %v626_v43 = vadd.f32 %v1727_v42, %v625_v38 }
 0x103   : > { %v824_v56 = vmul.f32 0.1, %v664_v46  ;;  %v840_v57 = vmul.f32 0.1, %v704_v47  ;;  %vm760_vm12 = vcmp.gt.f32.partialorder %v664_v46, 0.0  ;;  %vm776_vm13 = vcmp.gt.f32.partialorder %v704_v47, 0.0 }
 0x104   : > { %vm729_vm10 = vcmp.gt.f32.partialorder %v586_v41, 0.0  ;;  %v793_v44 = vmul.f32 0.1, %v586_v41  ;;  %vm745_vm11 = vcmp.gt.f32.partialorder %v626_v43, 0.0  ;;  %v809_v45 = vmul.f32 0.1, %v626_v43 }
 0x105   : > { %v888_v0 = vsel %vm760_vm12, %v664_v46, %v824_v56  ;;  %v904_v1 = vsel %vm776_vm13, %v704_v47, %v840_v57 }
 0x106   : > { %v857_v50 = vsel %vm729_vm10, %v586_v41, %v793_v44  ;;  %v873_v51 = vsel %vm745_vm11, %v626_v43, %v809_v45 }
 0x107   : > { %v1381_v52 = vpack.c.bf16 %v857_v50, %v856_v48  ;;  %v1421_v53 = vpack.c.bf16 %v873_v51, %v872_v49 }
 0x108   : > { %v665_v54 = vpop.f32.mrf.mxu2  ;;  %v705_v55 = vpop.f32.mrf.mxu3 }
 0x109   : > { %1517 = vst [vmem:[%s1740_s17 + $0x28] sm:$0xff] %v1381_v52   ;;  %v666_v58 = vadd.f32 %v1727_v42, %v665_v54  ;;  %v706_v59 = vadd.f32 %v1727_v42, %v705_v55  ;;  %v588_v60 = vpop.f32.mrf.mxu0  ;;  %v628_v61 = vpop.f32.mrf.mxu1 }
 0x10a   : > { %1525 = vst [vmem:[%s1740_s17 + $0x68] sm:$0xff] %v1421_v53   ;;  %v589_v6 = vadd.f32 %v1727_v42, %v588_v60  ;;  %v629_v7 = vadd.f32 %v1727_v42, %v628_v61 }
 0x10b   : > { %vm761_vm14 = vcmp.gt.f32.partialorder %v666_v58, 0.0  ;;  %v825_v62 = vmul.f32 0.1, %v666_v58  ;;  %vm777_vm15 = vcmp.gt.f32.partialorder %v706_v59, 0.0  ;;  %v841_v63 = vmul.f32 0.1, %v706_v59 }
 0x10c   : > { %v794_v12 = vmul.f32 0.1, %v589_v6  ;;  %v810_v13 = vmul.f32 0.1, %v629_v7  ;;  %vm730_vm0 = vcmp.gt.f32.partialorder %v589_v6, 0.0  ;;  %vm746_vm1 = vcmp.gt.f32.partialorder %v629_v7, 0.0 }
 0x10d   : > { %v889_v2 = vsel %vm761_vm14, %v666_v58, %v825_v62  ;;  %v905_v3 = vsel %vm777_vm15, %v706_v59, %v841_v63 }
 0x10e   : > { %v1461_v4 = vpack.c.bf16 %v889_v2, %v888_v0  ;;  %v1501_v5 = vpack.c.bf16 %v905_v3, %v904_v1  ;;  %v858_v20 = vsel %vm730_vm0, %v589_v6, %v794_v12  ;;  %v874_v21 = vsel %vm746_vm1, %v629_v7, %v810_v13 }
 0x110   : > { %1533 = vst [vmem:[%s1740_s17 + $0xa8] sm:$0xff] %v1461_v4   ;;  %v668_v8 = vpop.f32.mrf.mxu2  ;;  %v708_v9 = vpop.f32.mrf.mxu3 }
 0x111   : > { %1541 = vst [vmem:[%s1740_s17 + $0xe8] sm:$0xff] %v1501_v5   ;;  %v590_v10 = vpop.f32.mrf.mxu0  ;;  %v630_v11 = vpop.f32.mrf.mxu1  ;;  %v669_v18 = vadd.f32 %v1727_v42, %v668_v8  ;;  %v709_v19 = vadd.f32 %v1727_v42, %v708_v9 }
 0x112   : > { %v591_v14 = vadd.f32 %v1727_v42, %v590_v10  ;;  %v631_v15 = vadd.f32 %v1727_v42, %v630_v11 }
 0x113   : > { %v826_v28 = vmul.f32 0.1, %v669_v18  ;;  %v842_v29 = vmul.f32 0.1, %v709_v19  ;;  %vm762_vm4 = vcmp.gt.f32.partialorder %v669_v18, 0.0  ;;  %vm778_vm5 = vcmp.gt.f32.partialorder %v709_v19, 0.0 }
 0x114   : > { %vm731_vm2 = vcmp.gt.f32.partialorder %v591_v14, 0.0  ;;  %v795_v16 = vmul.f32 0.1, %v591_v14  ;;  %vm747_vm3 = vcmp.gt.f32.partialorder %v631_v15, 0.0  ;;  %v811_v17 = vmul.f32 0.1, %v631_v15 }
 0x115   : > { %v890_v36 = vsel %vm762_vm4, %v669_v18, %v826_v28  ;;  %v906_v37 = vsel %vm778_vm5, %v709_v19, %v842_v29 }
 0x116   : > { %v859_v22 = vsel %vm731_vm2, %v591_v14, %v795_v16  ;;  %v875_v23 = vsel %vm747_vm3, %v631_v15, %v811_v17 }
 0x117   : > { %v1386_v24 = vpack.c.bf16 %v859_v22, %v858_v20  ;;  %v1426_v25 = vpack.c.bf16 %v875_v23, %v874_v21 }
 0x118   : > { %v670_v26 = vpop.f32.mrf.mxu2  ;;  %v710_v27 = vpop.f32.mrf.mxu3 }
 0x119   : > { %1518 = vst [vmem:[%s1740_s17 + $0x30] sm:$0xff] %v1386_v24   ;;  %v671_v30 = vadd.f32 %v1727_v42, %v670_v26  ;;  %v711_v31 = vadd.f32 %v1727_v42, %v710_v27  ;;  %v593_v32 = vpop.f32.mrf.mxu0  ;;  %v633_v33 = vpop.f32.mrf.mxu1 }
 0x11a   : > { %1526 = vst [vmem:[%s1740_s17 + $0x70] sm:$0xff] %v1426_v25   ;;  %v594_v43 = vadd.f32 %v1727_v42, %v593_v32  ;;  %v634_v44 = vadd.f32 %v1727_v42, %v633_v33 }
 0x11b   : > { %vm763_vm6 = vcmp.gt.f32.partialorder %v671_v30, 0.0  ;;  %v827_v34 = vmul.f32 0.1, %v671_v30  ;;  %vm779_vm7 = vcmp.gt.f32.partialorder %v711_v31, 0.0  ;;  %v843_v35 = vmul.f32 0.1, %v711_v31 }
 0x11c   : > { %v796_v49 = vmul.f32 0.1, %v594_v43  ;;  %v812_v50 = vmul.f32 0.1, %v634_v44  ;;  %vm732_vm8 = vcmp.gt.f32.partialorder %v594_v43, 0.0  ;;  %vm748_vm9 = vcmp.gt.f32.partialorder %v634_v44, 0.0 }
 0x11d   : > { %v891_v38 = vsel %vm763_vm6, %v671_v30, %v827_v34  ;;  %v907_v39 = vsel %vm779_vm7, %v711_v31, %v843_v35 }
 0x11e   : > { %v1466_v40 = vpack.c.bf16 %v891_v38, %v890_v36  ;;  %v1506_v41 = vpack.c.bf16 %v907_v39, %v906_v37  ;;  %v860_v57 = vsel %vm732_vm8, %v594_v43, %v796_v49  ;;  %v876_v58 = vsel %vm748_vm9, %v634_v44, %v812_v50 }
 0x120   : > { %1534 = vst [vmem:[%s1740_s17 + $0xb0] sm:$0xff] %v1466_v40   ;;  %v673_v45 = vpop.f32.mrf.mxu2  ;;  %v713_v46 = vpop.f32.mrf.mxu3 }
 0x121   : > { %1542 = vst [vmem:[%s1740_s17 + $0xf0] sm:$0xff] %v1506_v41   ;;  %v595_v47 = vpop.f32.mrf.mxu0  ;;  %v635_v48 = vpop.f32.mrf.mxu1  ;;  %v674_v55 = vadd.f32 %v1727_v42, %v673_v45  ;;  %v714_v56 = vadd.f32 %v1727_v42, %v713_v46 }
 0x122   : > { %v596_v51 = vadd.f32 %v1727_v42, %v595_v47  ;;  %v636_v52 = vadd.f32 %v1727_v42, %v635_v48 }
 0x123   : > { %v828_v1 = vmul.f32 0.1, %v674_v55  ;;  %v844_v2 = vmul.f32 0.1, %v714_v56  ;;  %vm764_vm12 = vcmp.gt.f32.partialorder %v674_v55, 0.0  ;;  %vm780_vm13 = vcmp.gt.f32.partialorder %v714_v56, 0.0 }
 0x124   : > { %vm733_vm10 = vcmp.gt.f32.partialorder %v596_v51, 0.0  ;;  %v797_v53 = vmul.f32 0.1, %v596_v51  ;;  %vm749_vm11 = vcmp.gt.f32.partialorder %v636_v52, 0.0  ;;  %v813_v54 = vmul.f32 0.1, %v636_v52 }
 0x125   : > { %v892_v7 = vsel %vm764_vm12, %v674_v55, %v828_v1  ;;  %v908_v8 = vsel %vm780_vm13, %v714_v56, %v844_v2 }
 0x126   : > { %v861_v59 = vsel %vm733_vm10, %v596_v51, %v797_v53  ;;  %v877_v60 = vsel %vm749_vm11, %v636_v52, %v813_v54 }
 0x127   : > { %v1391_v61 = vpack.c.bf16 %v861_v59, %v860_v57  ;;  %v1431_v62 = vpack.c.bf16 %v877_v60, %v876_v58 }
 0x128   : > { %v675_v63 = vpop.f32.mrf.mxu2  ;;  %v715_v0 = vpop.f32.mrf.mxu3 }
 0x129   : > { %1519 = vst [vmem:[%s1740_s17 + $0x38] sm:$0xff] %v1391_v61   ;;  %v676_v3 = vadd.f32 %v1727_v42, %v675_v63  ;;  %v716_v4 = vadd.f32 %v1727_v42, %v715_v0 }
 0x12a   : > { %1527 = vst [vmem:[%s1740_s17 + $0x78] sm:$0xff] %v1431_v62  }
 0x12b   : > { %vm765_vm14 = vcmp.gt.f32.partialorder %v676_v3, 0.0  ;;  %v829_v5 = vmul.f32 0.1, %v676_v3  ;;  %vm781_vm15 = vcmp.gt.f32.partialorder %v716_v4, 0.0  ;;  %v845_v6 = vmul.f32 0.1, %v716_v4 }
 0x12d   : > { %v893_v9 = vsel %vm765_vm14, %v676_v3, %v829_v5  ;;  %v909_v10 = vsel %vm781_vm15, %v716_v4, %v845_v6 }
 0x12e   : > { %v1471_v11 = vpack.c.bf16 %v893_v9, %v892_v7  ;;  %v1511_v12 = vpack.c.bf16 %v909_v10, %v908_v8 }
 0x130   : > { %1535 = vst [vmem:[%s1740_s17 + $0xb8] sm:$0xff] %v1471_v11  }
 0x131   : > { %1543 = vst [vmem:[%s1740_s17 + $0xf8] sm:$0xff] %v1511_v12  }
 0x132 PF: > { %s13_s14 = sadd.s32 1, %s1615_s14   ;;  %s1845_s12 = smov %s1611_s13 }
 0x133   : > { %p10_p5 = scmp.ge.s32.totalorder %s13_s14, 4   ;;  %s1846_s13 = smov %s1848_s15 }
 0x135   :  { %12 = sbr.rel (!%p10_p5) target bundleno = 2 (0x2), region = 68 }

</bundles_post_ra>
